<compile_context>
chip_gen: v7x
topology: tpu7x:2x2x1
jax: 0.10.0
libtpu: 0.0.40
codegen_flags: <defaults>
</compile_context>

<pallas_src>
import math

import numpy as np
import jax
import jax.numpy as jnp
from jax import lax
from jax.experimental import pallas as pl
from jax.experimental.pallas import tpu as pltpu

# ---------------- model config (small, Llama-like) ----------------
B = 2           # batch
T = 8           # sequence length (block_size)
C = 32          # n_embd
N_HEAD = 4
N_KV_HEAD = 2
HEAD_DIM = C // N_HEAD          # 8
KV_C = N_KV_HEAD * HEAD_DIM     # 16
REP = N_HEAD // N_KV_HEAD       # 2 query heads per kv head
INTERMEDIATE = 64               # intermediate_size
EPS = 1e-5                      # rms_norm_eps
ROPE_BASE = 10000.0             # LlamaRotaryEmbedding default base

# ---- packed-operand layout (host prep <-> kernel must agree) ----
# constant slab (f32), shape (CONST_ROWS, C); rows padded to sublane (8) bounds
ROW_LN1 = 0
ROW_LN2 = 1
ROW_COS = 8
ROW_SIN = ROW_COS + B * T
CONST_ROWS = ROW_SIN + B * T            # 40

# weight slab (bf16), shape (C, WC_COLS); 128-lane aligned segments
QKV_COLS = 2 * C + 3 * KV_C             # 112: [q*s | rot(q)*s | k | rot(k) | v]
QKV_PAD = 128                           # padded so the matmul result is one full vreg
COL_QKV = 0
COL_GU = QKV_PAD                        # 128: [gate | up]  (2*INTERMEDIATE = 128)
COL_WO = COL_GU + 2 * INTERMEDIATE      # 256
WC_COLS = COL_WO + C                    # 288


def block_kernel(x_ref, consts_ref, wc_ref, wd_ref, out_ref):
    f32, bf16 = jnp.float32, jnp.bfloat16
    hd = HEAD_DIM
    bt = B * T

    x = x_ref[...]                                        # (B*T, C) f32

    ln1 = consts_ref[ROW_LN1:ROW_LN1 + 1, :]              # (1, C)
    ln2 = consts_ref[ROW_LN2:ROW_LN2 + 1, :]
    cos = consts_ref[ROW_COS:ROW_COS + bt, :]             # (B*T, C) per-head tiled
    sin = consts_ref[ROW_SIN:ROW_SIN + bt, :]

    # ---- input RMSNorm (f32 math, bf16 matmul operand) ----
    inv1 = lax.rsqrt(jnp.mean(x * x, axis=-1, keepdims=True) + EPS)
    hn = (x * inv1 * ln1).astype(bf16)                    # (B*T, C)

    # ---- fused projection: [q*s | rot_half(q)*s | k | rot_half(k) | v | pad]
    qkv = jnp.dot(hn, wc_ref[:, COL_QKV:COL_QKV + QKV_PAD],
                  preferred_element_type=f32)             # (B*T, 128) full-lane vreg
    q     = qkv[:, 0:C]
    q_rot = qkv[:, C:2 * C]
    k     = qkv[:, 2 * C:2 * C + KV_C]
    k_rot = qkv[:, 2 * C + KV_C:2 * C + 2 * KV_C]
    v     = qkv[:, 2 * C + 2 * KV_C:2 * C + 3 * KV_C]

    # ---- RoPE (rotation/scale folded into the weight -> pure elementwise) --
    q = q * cos + q_rot * sin                             # (B*T, C), already * 1/sqrt(hd)
    k = k * cos[:, :KV_C] + k_rot * sin[:, :KV_C]         # (B*T, KV_C)

    # ---- grouped-GQA causal attention: batch dim = B*N_KV_HEAD ------------
    # per (batch, kv-group): Q has the group's REP query heads stacked along
    # rows -> (REP*T, hd); K/V are fed once per group (no duplication).
    q_list, k_list, v_list = [], [], []
    for b in range(B):
        r0 = b * T
        for g in range(N_KV_HEAD):
            q_heads = [q[r0:r0 + T, (g * REP + r) * hd:(g * REP + r + 1) * hd]
                       for r in range(REP)]
            q_list.append(jnp.concatenate(q_heads, axis=0))   # (REP*T, hd)
            k_list.append(k[r0:r0 + T, g * hd:(g + 1) * hd])  # (T, hd)
            v_list.append(v[r0:r0 + T, g * hd:(g + 1) * hd])  # (T, hd)
    qg = jnp.stack(q_list, axis=0).astype(bf16)           # (B*G, REP*T, hd)
    kg = jnp.stack(k_list, axis=0).astype(bf16)            # (B*G, T, hd)
    vg = jnp.stack(v_list, axis=0).astype(bf16)            # (B*G, T, hd)

    row = lax.broadcasted_iota(jnp.int32, (T, T), 0)
    col = lax.broadcasted_iota(jnp.int32, (T, T), 1)
    causal = col > row                                     # (T, T)
    causal = jnp.concatenate([causal] * REP, axis=0)       # (REP*T, T)

    s = jnp.einsum('btd,bkd->btk', qg, kg,
                   preferred_element_type=f32)             # (B*G, REP*T, T)
    # finite mask: NaN-safe; would give uniform probs on a fully-masked row
    s = jnp.where(causal[None, :, :], -1e30, s)
    m = jnp.max(s, axis=-1, keepdims=True)
    e = jnp.exp(s - m)
    p = e * pl.reciprocal(jnp.sum(e, axis=-1, keepdims=True), approx=True)
    o = jnp.einsum('btk,bkd->btd', p.astype(bf16), vg,
                   preferred_element_type=f32)             # (B*G, REP*T, hd)

    # reassemble (B*T, C): head h = g*REP + r lives in o[b*G+g, r*T:(r+1)*T]
    blocks = []
    for b in range(B):
        heads = [o[b * N_KV_HEAD + g, r * T:(r + 1) * T, :]
                 for g in range(N_KV_HEAD) for r in range(REP)]
        blocks.append(jnp.concatenate(heads, axis=-1))     # (T, C)
    attn = jnp.concatenate(blocks, axis=0).astype(bf16)    # (B*T, C)

    attn = jnp.dot(attn, wc_ref[:, COL_WO:COL_WO + C],
                   preferred_element_type=f32)             # o_proj

    # ---- first residual ----
    h1 = x + attn                                          # (B*T, C) f32

    # ---- post-attention RMSNorm + fused SiLU-gated MLP ----
    inv2 = lax.rsqrt(jnp.mean(h1 * h1, axis=-1, keepdims=True) + EPS)
    hn2 = (h1 * inv2 * ln2).astype(bf16)
    gu = jnp.dot(hn2, wc_ref[:, COL_GU:COL_GU + 2 * INTERMEDIATE],
                 preferred_element_type=f32)               # (B*T, 2I) lane-dense
    gate = gu[:, :INTERMEDIATE]
    up = gu[:, INTERMEDIATE:]
    act = gate * jax.nn.sigmoid(gate)                      # SiLU (f32)
    mlp = jnp.dot((act * up).astype(bf16), wd_ref[...],
                  preferred_element_type=f32)

    # NOTE: output last dim is 32 (<128) -> masked stores; fine at toy size.
    out_ref[...] = h1 + mlp


def llama_block_pallas(x, fused_params):
    consts, w_c, w_d = fused_params
    b, t, c = x.shape
    x2 = x.reshape(b * t, c)            # fold batch into rows (free, outside kernel)
    vmem = pltpu.MemorySpace.VMEM
    out = pl.pallas_call(
        block_kernel,
        out_shape=jax.ShapeDtypeStruct((b * t, c), x.dtype),
        in_specs=[pl.BlockSpec(memory_space=vmem)] * 4,
        out_specs=pl.BlockSpec(memory_space=vmem),
    )(x2, consts, w_c, w_d)
    return out.reshape(b, t, c)


# ---------------- host-side weight preparation (done once) ----------------
def prepare_pallas_params(params):
    """Fold rotate_half + 1/sqrt(hd) into the QKV projection, fuse
    QKV / gate|up / o_proj into one bf16 weight slab (128-lane aligned
    segments), and pack ln1/ln2/cos/sin into one f32 constant slab."""
    (ln1, wq, wk, wv, wo, cos, sin, ln2, wg, wu, wd) = params
    scale = 1.0 / math.sqrt(HEAD_DIM)
    half = HEAD_DIM // 2

    # rotate_half(x) == x @ r_head (per head block), signs included.
    r_head = np.zeros((HEAD_DIM, HEAD_DIM), np.float32)
    r_head[half:, :half] = -np.eye(half, dtype=np.float32)
    r_head[:half, half:] = np.eye(half, dtype=np.float32)
    r_q = jnp.asarray(np.kron(np.eye(N_HEAD, dtype=np.float32), r_head))
    r_k = jnp.asarray(np.kron(np.eye(N_KV_HEAD, dtype=np.float32), r_head))

    wqkv = jnp.concatenate(
        [wq * scale, (wq @ r_q) * scale, wk, wk @ r_k, wv], axis=1)   # (C, 112)
    wqkv = jnp.pad(wqkv, ((0, 0), (0, QKV_PAD - QKV_COLS)))          # -> (C, 128)
    wgu = jnp.concatenate([wg, wu], axis=1)                           # (C, 128)
    w_c = jnp.concatenate([wqkv, wgu, wo], axis=1).astype(jnp.bfloat16)  # (C, 288)
    w_d = wd.astype(jnp.bfloat16)                                     # (I, C)

    cos_t = jnp.tile(cos, (1, N_HEAD))          # (T, C); first KV_C cols serve K
    sin_t = jnp.tile(sin, (1, N_HEAD))
    cos_bt = jnp.tile(cos_t, (B, 1))            # (B*T, C): per flattened row
    sin_bt = jnp.tile(sin_t, (B, 1))

    consts = jnp.zeros((CONST_ROWS, C), jnp.float32)
    consts = consts.at[ROW_LN1].set(ln1[0]).at[ROW_LN2].set(ln2[0])
    consts = consts.at[ROW_COS:ROW_COS + B * T].set(cos_bt)
    consts = consts.at[ROW_SIN:ROW_SIN + B * T].set(sin_bt)
    return (consts, w_c, w_d)


# ---------------- pure-JAX reference (mirrors the PyTorch code) ----------------
def ref_block(x, params):
    (ln1, wq, wk, wv, wo, cos, sin, ln2, wg, wu, wd) = params
    b, t, c = x.shape

    def rmsnorm(z, w):
        return z * lax.rsqrt(jnp.mean(z * z, axis=-1, keepdims=True) + EPS) * w[0]

    hn = rmsnorm(x, ln1)
    q = (hn @ wq).reshape(b, t, N_HEAD, HEAD_DIM)
    k = (hn @ wk).reshape(b, t, N_KV_HEAD, HEAD_DIM)
    v = (hn @ wv).reshape(b, t, N_KV_HEAD, HEAD_DIM)

    cos4 = cos[None, :, None, :]
    sin4 = sin[None, :, None, :]

    def rot_half(z):
        half = z.shape[-1] // 2
        return jnp.concatenate([-z[..., half:], z[..., :half]], axis=-1)

    q = q * cos4 + rot_half(q) * sin4
    k = k * cos4 + rot_half(k) * sin4
    k = jnp.repeat(k, N_HEAD // N_KV_HEAD, axis=2)
    v = jnp.repeat(v, N_HEAD // N_KV_HEAD, axis=2)

    q = q.transpose(0, 2, 1, 3)
    k = k.transpose(0, 2, 1, 3)
    v = v.transpose(0, 2, 1, 3)

    scale = 1.0 / math.sqrt(HEAD_DIM)
    scores = jnp.einsum("bhqd,bhkd->bhqk", q, k) * scale
    mask = jnp.triu(jnp.ones((t, t), dtype=bool), k=1)
    scores = jnp.where(mask, -jnp.inf, scores)
    probs = jax.nn.softmax(scores, axis=-1)
    out = jnp.einsum("bhqk,bhkd->bhqd", probs, v)
    out = out.transpose(0, 2, 1, 3).reshape(b, t, c)
    h1 = x + out @ wo

    hn2 = rmsnorm(h1, ln2)
    gate = hn2 @ wg
    mlp = (gate * jax.nn.sigmoid(gate) * (hn2 @ wu)) @ wd
    return h1 + mlp


def make_params(key):
    ks = jax.random.split(key, 8)
    s = 0.05
    ln1 = jnp.ones((1, C), jnp.float32)
    ln2 = jnp.ones((1, C), jnp.float32)
    wq = jax.random.normal(ks[0], (C, C), jnp.float32) * s
    wk = jax.random.normal(ks[1], (C, KV_C), jnp.float32) * s
    wv = jax.random.normal(ks[2], (C, KV_C), jnp.float32) * s
    wo = jax.random.normal(ks[3], (C, C), jnp.float32) * s
    wg = jax.random.normal(ks[4], (C, INTERMEDIATE), jnp.float32) * s
    wu = jax.random.normal(ks[5], (C, INTERMEDIATE), jnp.float32) * s
    wd = jax.random.normal(ks[6], (INTERMEDIATE, C), jnp.float32) * s

    # rotary embedding tables (glue, computed outside the kernel)
    inv_freq = 1.0 / (ROPE_BASE ** (jnp.arange(0, HEAD_DIM, 2, dtype=jnp.float32) / HEAD_DIM))
    tpos = jnp.arange(T, dtype=jnp.float32)
    freqs = jnp.einsum("i,j->ij", tpos, inv_freq)        # (T, hd/2)
    emb = jnp.concatenate([freqs, freqs], axis=-1)       # (T, hd)
    cos = jnp.cos(emb)
    sin = jnp.sin(emb)

    return (ln1, wq, wk, wv, wo, cos, sin, ln2, wg, wu, wd)


if __name__ == "__main__":
    key = jax.random.PRNGKey(0)
    kx, kp = jax.random.split(key)
    x = jax.random.normal(kx, (B, T, C), jnp.float32)
    params = make_params(kp)
    fused = prepare_pallas_params(params)   # one-time weight prep

    out = jax.jit(llama_block_pallas)(x, fused)
    out = jax.block_until_ready(out)

    ref = ref_block(x, params)
    assert out.shape == (B, T, C)
    err = jnp.max(jnp.abs(out - ref))
    # bf16 matmul operands + approx EUP reciprocal -> ~1e-3-level deviation
    # from the exact f32 reference; 1e-2 tolerance leaves margin.
    assert jnp.allclose(out, ref, atol=1e-2, rtol=1e-2), f"max abs err {err}"

    print("KERNEL_OK")
</pallas_src>

<mosaic_0001>
module attributes {stable_mosaic.version = 11 : i64} {
  func.func @block_kernel(%arg0: memref<16x32xf32, #tpu.memory_space<vmem>>, %arg1: memref<40x32xf32, #tpu.memory_space<vmem>>, %arg2: memref<32x288xbf16, #tpu.memory_space<vmem>>, %arg3: memref<64x32xbf16, #tpu.memory_space<vmem>>, %arg4: memref<16x32xf32, #tpu.memory_space<vmem>>) attributes {dimension_semantics = [], scalar_prefetch = 0 : i64, scratch_operands = 0 : i64, tpu.core_type = #tpu.core_type<tc>} {
    %c0 = arith.constant 0 : index
    %c0_0 = arith.constant 0 : index
    %0 = vector.load %arg0[%c0, %c0_0] : memref<16x32xf32, #tpu.memory_space<vmem>>, vector<16x32xf32>
    %c0_1 = arith.constant 0 : index
    %c0_2 = arith.constant 0 : index
    %1 = vector.load %arg1[%c0_1, %c0_2] : memref<40x32xf32, #tpu.memory_space<vmem>>, vector<1x32xf32>
    %c1 = arith.constant 1 : index
    %c0_3 = arith.constant 0 : index
    %2 = vector.load %arg1[%c1, %c0_3] : memref<40x32xf32, #tpu.memory_space<vmem>>, vector<1x32xf32>
    %c8 = arith.constant 8 : index
    %c0_4 = arith.constant 0 : index
    %3 = vector.load %arg1[%c8, %c0_4] : memref<40x32xf32, #tpu.memory_space<vmem>>, vector<16x32xf32>
    %c24 = arith.constant 24 : index
    %c0_5 = arith.constant 0 : index
    %4 = vector.load %arg1[%c24, %c0_5] : memref<40x32xf32, #tpu.memory_space<vmem>>, vector<16x32xf32>
    %5 = arith.mulf %0, %0 : vector<16x32xf32>
    %cst = arith.constant dense<0.000000e+00> : vector<16xf32>
    %6 = vector.multi_reduction <add>, %5, %cst [1] : vector<16x32xf32> to vector<16xf32>
    %7 = vector.shape_cast %6 : vector<16xf32> to vector<16x1xf32>
    %cst_6 = arith.constant 3.200000e+01 : f32
    %8 = vector.broadcast %cst_6 : f32 to vector<16x1xf32>
    %9 = arith.divf %7, %8 : vector<16x1xf32>
    %cst_7 = arith.constant 9.99999974E-6 : f32
    %10 = vector.broadcast %cst_7 : f32 to vector<16x1xf32>
    %11 = arith.addf %9, %10 : vector<16x1xf32>
    %12 = math.rsqrt %11 : vector<16x1xf32>
    %13 = vector.broadcast %12 : vector<16x1xf32> to vector<16x32xf32>
    %14 = arith.mulf %0, %13 : vector<16x32xf32>
    %15 = vector.broadcast %1 : vector<1x32xf32> to vector<16x32xf32>
    %16 = arith.mulf %14, %15 : vector<16x32xf32>
    %17 = arith.truncf %16 : vector<16x32xf32> to vector<16x32xbf16>
    %c0_8 = arith.constant 0 : index
    %c0_9 = arith.constant 0 : index
    %18 = vector.load %arg2[%c0_8, %c0_9] : memref<32x288xbf16, #tpu.memory_space<vmem>>, vector<32x128xbf16>
    %cst_10 = arith.constant dense<0.000000e+00> : vector<16x128xf32>
    %19 = tpu.matmul %17, %18, %cst_10 {dimension_numbers = #tpu.dot_dimension_numbers<[1], [0], [0], [1], [0, 0, 1, 1], [], []>} : vector<16x32xbf16>, vector<32x128xbf16>, vector<16x128xf32> -> vector<16x128xf32>
    %20 = vector.extract_strided_slice %19 {offsets = [0, 0], sizes = [16, 32], strides = [1, 1]} : vector<16x128xf32> to vector<16x32xf32>
    %21 = vector.extract_strided_slice %19 {offsets = [0, 32], sizes = [16, 32], strides = [1, 1]} : vector<16x128xf32> to vector<16x32xf32>
    %22 = vector.extract_strided_slice %19 {offsets = [0, 64], sizes = [16, 16], strides = [1, 1]} : vector<16x128xf32> to vector<16x16xf32>
    %23 = vector.extract_strided_slice %19 {offsets = [0, 80], sizes = [16, 16], strides = [1, 1]} : vector<16x128xf32> to vector<16x16xf32>
    %24 = vector.extract_strided_slice %19 {offsets = [0, 96], sizes = [16, 16], strides = [1, 1]} : vector<16x128xf32> to vector<16x16xf32>
    %25 = arith.mulf %20, %3 : vector<16x32xf32>
    %26 = arith.mulf %21, %4 : vector<16x32xf32>
    %27 = arith.addf %25, %26 : vector<16x32xf32>
    %28 = vector.extract_strided_slice %3 {offsets = [0, 0], sizes = [16, 16], strides = [1, 1]} : vector<16x32xf32> to vector<16x16xf32>
    %29 = arith.mulf %22, %28 : vector<16x16xf32>
    %30 = vector.extract_strided_slice %4 {offsets = [0, 0], sizes = [16, 16], strides = [1, 1]} : vector<16x32xf32> to vector<16x16xf32>
    %31 = arith.mulf %23, %30 : vector<16x16xf32>
    %32 = arith.addf %29, %31 : vector<16x16xf32>
    %33 = vector.extract_strided_slice %27 {offsets = [0, 0], sizes = [8, 8], strides = [1, 1]} : vector<16x32xf32> to vector<8x8xf32>
    %34 = vector.extract_strided_slice %27 {offsets = [0, 8], sizes = [8, 8], strides = [1, 1]} : vector<16x32xf32> to vector<8x8xf32>
    %35 = tpu.concatenate %33, %34 in 0 : vector<8x8xf32>, vector<8x8xf32> -> vector<16x8xf32>
    %36 = vector.extract_strided_slice %32 {offsets = [0, 0], sizes = [8, 8], strides = [1, 1]} : vector<16x16xf32> to vector<8x8xf32>
    %37 = vector.extract_strided_slice %24 {offsets = [0, 0], sizes = [8, 8], strides = [1, 1]} : vector<16x16xf32> to vector<8x8xf32>
    %38 = vector.extract_strided_slice %27 {offsets = [0, 16], sizes = [8, 8], strides = [1, 1]} : vector<16x32xf32> to vector<8x8xf32>
    %39 = vector.extract_strided_slice %27 {offsets = [0, 24], sizes = [8, 8], strides = [1, 1]} : vector<16x32xf32> to vector<8x8xf32>
    %40 = tpu.concatenate %38, %39 in 0 : vector<8x8xf32>, vector<8x8xf32> -> vector<16x8xf32>
    %41 = vector.extract_strided_slice %32 {offsets = [0, 8], sizes = [8, 8], strides = [1, 1]} : vector<16x16xf32> to vector<8x8xf32>
    %42 = vector.extract_strided_slice %24 {offsets = [0, 8], sizes = [8, 8], strides = [1, 1]} : vector<16x16xf32> to vector<8x8xf32>
    %43 = vector.extract_strided_slice %27 {offsets = [8, 0], sizes = [8, 8], strides = [1, 1]} : vector<16x32xf32> to vector<8x8xf32>
    %44 = vector.extract_strided_slice %27 {offsets = [8, 8], sizes = [8, 8], strides = [1, 1]} : vector<16x32xf32> to vector<8x8xf32>
    %45 = tpu.concatenate %43, %44 in 0 : vector<8x8xf32>, vector<8x8xf32> -> vector<16x8xf32>
    %46 = vector.extract_strided_slice %32 {offsets = [8, 0], sizes = [8, 8], strides = [1, 1]} : vector<16x16xf32> to vector<8x8xf32>
    %47 = vector.extract_strided_slice %24 {offsets = [8, 0], sizes = [8, 8], strides = [1, 1]} : vector<16x16xf32> to vector<8x8xf32>
    %48 = vector.extract_strided_slice %27 {offsets = [8, 16], sizes = [8, 8], strides = [1, 1]} : vector<16x32xf32> to vector<8x8xf32>
    %49 = vector.extract_strided_slice %27 {offsets = [8, 24], sizes = [8, 8], strides = [1, 1]} : vector<16x32xf32> to vector<8x8xf32>
    %50 = tpu.concatenate %48, %49 in 0 : vector<8x8xf32>, vector<8x8xf32> -> vector<16x8xf32>
    %51 = vector.extract_strided_slice %32 {offsets = [8, 8], sizes = [8, 8], strides = [1, 1]} : vector<16x16xf32> to vector<8x8xf32>
    %52 = vector.extract_strided_slice %24 {offsets = [8, 8], sizes = [8, 8], strides = [1, 1]} : vector<16x16xf32> to vector<8x8xf32>
    %53 = vector.shape_cast %35 : vector<16x8xf32> to vector<1x16x8xf32>
    %54 = vector.shape_cast %40 : vector<16x8xf32> to vector<1x16x8xf32>
    %55 = vector.shape_cast %45 : vector<16x8xf32> to vector<1x16x8xf32>
    %56 = vector.shape_cast %50 : vector<16x8xf32> to vector<1x16x8xf32>
    %57 = tpu.concatenate %53, %54, %55, %56 in 0 : vector<1x16x8xf32>, vector<1x16x8xf32>, vector<1x16x8xf32>, vector<1x16x8xf32> -> vector<4x16x8xf32>
    %58 = arith.truncf %57 : vector<4x16x8xf32> to vector<4x16x8xbf16>
    %59 = vector.shape_cast %36 : vector<8x8xf32> to vector<1x8x8xf32>
    %60 = vector.shape_cast %41 : vector<8x8xf32> to vector<1x8x8xf32>
    %61 = vector.shape_cast %46 : vector<8x8xf32> to vector<1x8x8xf32>
    %62 = vector.shape_cast %51 : vector<8x8xf32> to vector<1x8x8xf32>
    %63 = tpu.concatenate %59, %60, %61, %62 in 0 : vector<1x8x8xf32>, vector<1x8x8xf32>, vector<1x8x8xf32>, vector<1x8x8xf32> -> vector<4x8x8xf32>
    %64 = arith.truncf %63 : vector<4x8x8xf32> to vector<4x8x8xbf16>
    %65 = vector.shape_cast %37 : vector<8x8xf32> to vector<1x8x8xf32>
    %66 = vector.shape_cast %42 : vector<8x8xf32> to vector<1x8x8xf32>
    %67 = vector.shape_cast %47 : vector<8x8xf32> to vector<1x8x8xf32>
    %68 = vector.shape_cast %52 : vector<8x8xf32> to vector<1x8x8xf32>
    %69 = tpu.concatenate %65, %66, %67, %68 in 0 : vector<1x8x8xf32>, vector<1x8x8xf32>, vector<1x8x8xf32>, vector<1x8x8xf32> -> vector<4x8x8xf32>
    %70 = arith.truncf %69 : vector<4x8x8xf32> to vector<4x8x8xbf16>
    %71 = tpu.iota {dimensions = array<i32: 0>} : vector<8x8xi32>
    %72 = tpu.iota {dimensions = array<i32: 1>} : vector<8x8xi32>
    %73 = arith.cmpi sgt, %72, %71 : vector<8x8xi32>
    %74 = tpu.concatenate %73, %73 in 0 : vector<8x8xi1>, vector<8x8xi1> -> vector<16x8xi1>
    "tpu.trace_start"() <{level = 10 : i32, message = "btd,bkd->btk"}> : () -> ()
    %cst_11 = arith.constant dense<0.000000e+00> : vector<4x16x8xf32>
    %75 = tpu.matmul %58, %64, %cst_11 {dimension_numbers = #tpu.dot_dimension_numbers<[2], [2], [1], [1], [0, 0, 0, 1, 1, 1], [0], [0]>} : vector<4x16x8xbf16>, vector<4x8x8xbf16>, vector<4x16x8xf32> -> vector<4x16x8xf32>
    "tpu.trace_stop"() : () -> ()
    %76 = vector.shape_cast %74 : vector<16x8xi1> to vector<1x16x8xi1>
    %cst_12 = arith.constant -1.000000e+30 : f32
    %77 = vector.shape_cast %76 : vector<1x16x8xi1> to vector<1x16x8xi1>
    %78 = vector.broadcast %77 : vector<1x16x8xi1> to vector<4x16x8xi1>
    %79 = vector.broadcast %cst_12 : f32 to vector<4x16x8xf32>
    %80 = arith.select %78, %79, %75 : vector<4x16x8xi1>, vector<4x16x8xf32>
    %cst_13 = arith.constant dense<0xFF800000> : vector<4x16xf32>
    %81 = vector.multi_reduction <maximumf>, %80, %cst_13 [2] : vector<4x16x8xf32> to vector<4x16xf32>
    %82 = vector.shape_cast %81 : vector<4x16xf32> to vector<4x16x1xf32>
    %83 = vector.broadcast %82 : vector<4x16x1xf32> to vector<4x16x8xf32>
    %84 = arith.subf %80, %83 : vector<4x16x8xf32>
    %85 = math.exp %84 : vector<4x16x8xf32>
    %cst_14 = arith.constant dense<0.000000e+00> : vector<4x16xf32>
    %86 = vector.multi_reduction <add>, %85, %cst_14 [2] : vector<4x16x8xf32> to vector<4x16xf32>
    %87 = vector.shape_cast %86 : vector<4x16xf32> to vector<4x16x1xf32>
    %88 = tpu.reciprocal %87 {approx = true} : vector<4x16x1xf32> -> vector<4x16x1xf32>
    %89 = vector.broadcast %88 : vector<4x16x1xf32> to vector<4x16x8xf32>
    %90 = arith.mulf %85, %89 : vector<4x16x8xf32>
    %91 = arith.truncf %90 : vector<4x16x8xf32> to vector<4x16x8xbf16>
    "tpu.trace_start"() <{level = 10 : i32, message = "btk,bkd->btd"}> : () -> ()
    %cst_15 = arith.constant dense<0.000000e+00> : vector<4x16x8xf32>
    %92 = tpu.matmul %91, %70, %cst_15 {dimension_numbers = #tpu.dot_dimension_numbers<[2], [1], [1], [2], [0, 0, 0, 1, 1, 2], [0], [0]>} : vector<4x16x8xbf16>, vector<4x8x8xbf16>, vector<4x16x8xf32> -> vector<4x16x8xf32>
    "tpu.trace_stop"() : () -> ()
    %93 = vector.extract_strided_slice %92 {offsets = [0, 0, 0], sizes = [1, 8, 8], strides = [1, 1, 1]} : vector<4x16x8xf32> to vector<1x8x8xf32>
    %94 = vector.shape_cast %93 : vector<1x8x8xf32> to vector<8x8xf32>
    %95 = vector.extract_strided_slice %92 {offsets = [0, 8, 0], sizes = [1, 8, 8], strides = [1, 1, 1]} : vector<4x16x8xf32> to vector<1x8x8xf32>
    %96 = vector.shape_cast %95 : vector<1x8x8xf32> to vector<8x8xf32>
    %97 = vector.extract_strided_slice %92 {offsets = [1, 0, 0], sizes = [1, 8, 8], strides = [1, 1, 1]} : vector<4x16x8xf32> to vector<1x8x8xf32>
    %98 = vector.shape_cast %97 : vector<1x8x8xf32> to vector<8x8xf32>
    %99 = vector.extract_strided_slice %92 {offsets = [1, 8, 0], sizes = [1, 8, 8], strides = [1, 1, 1]} : vector<4x16x8xf32> to vector<1x8x8xf32>
    %100 = vector.shape_cast %99 : vector<1x8x8xf32> to vector<8x8xf32>
    %101 = tpu.concatenate %94, %96, %98, %100 in 1 : vector<8x8xf32>, vector<8x8xf32>, vector<8x8xf32>, vector<8x8xf32> -> vector<8x32xf32>
    %102 = vector.extract_strided_slice %92 {offsets = [2, 0, 0], sizes = [1, 8, 8], strides = [1, 1, 1]} : vector<4x16x8xf32> to vector<1x8x8xf32>
    %103 = vector.shape_cast %102 : vector<1x8x8xf32> to vector<8x8xf32>
    %104 = vector.extract_strided_slice %92 {offsets = [2, 8, 0], sizes = [1, 8, 8], strides = [1, 1, 1]} : vector<4x16x8xf32> to vector<1x8x8xf32>
    %105 = vector.shape_cast %104 : vector<1x8x8xf32> to vector<8x8xf32>
    %106 = vector.extract_strided_slice %92 {offsets = [3, 0, 0], sizes = [1, 8, 8], strides = [1, 1, 1]} : vector<4x16x8xf32> to vector<1x8x8xf32>
    %107 = vector.shape_cast %106 : vector<1x8x8xf32> to vector<8x8xf32>
    %108 = vector.extract_strided_slice %92 {offsets = [3, 8, 0], sizes = [1, 8, 8], strides = [1, 1, 1]} : vector<4x16x8xf32> to vector<1x8x8xf32>
    %109 = vector.shape_cast %108 : vector<1x8x8xf32> to vector<8x8xf32>
    %110 = tpu.concatenate %103, %105, %107, %109 in 1 : vector<8x8xf32>, vector<8x8xf32>, vector<8x8xf32>, vector<8x8xf32> -> vector<8x32xf32>
    %111 = tpu.concatenate %101, %110 in 0 : vector<8x32xf32>, vector<8x32xf32> -> vector<16x32xf32>
    %112 = arith.truncf %111 : vector<16x32xf32> to vector<16x32xbf16>
    %c0_16 = arith.constant 0 : index
    %c256 = arith.constant 256 : index
    %113 = vector.load %arg2[%c0_16, %c256] : memref<32x288xbf16, #tpu.memory_space<vmem>>, vector<32x32xbf16>
    %cst_17 = arith.constant dense<0.000000e+00> : vector<16x32xf32>
    %114 = tpu.matmul %112, %113, %cst_17 {dimension_numbers = #tpu.dot_dimension_numbers<[1], [0], [0], [1], [0, 0, 1, 1], [], []>} : vector<16x32xbf16>, vector<32x32xbf16>, vector<16x32xf32> -> vector<16x32xf32>
    %115 = arith.addf %0, %114 : vector<16x32xf32>
    %116 = arith.mulf %115, %115 : vector<16x32xf32>
    %cst_18 = arith.constant dense<0.000000e+00> : vector<16xf32>
    %117 = vector.multi_reduction <add>, %116, %cst_18 [1] : vector<16x32xf32> to vector<16xf32>
    %118 = vector.shape_cast %117 : vector<16xf32> to vector<16x1xf32>
    %cst_19 = arith.constant 3.200000e+01 : f32
    %119 = vector.broadcast %cst_19 : f32 to vector<16x1xf32>
    %120 = arith.divf %118, %119 : vector<16x1xf32>
    %cst_20 = arith.constant 9.99999974E-6 : f32
    %121 = vector.broadcast %cst_20 : f32 to vector<16x1xf32>
    %122 = arith.addf %120, %121 : vector<16x1xf32>
    %123 = math.rsqrt %122 : vector<16x1xf32>
    %124 = vector.broadcast %123 : vector<16x1xf32> to vector<16x32xf32>
    %125 = arith.mulf %115, %124 : vector<16x32xf32>
    %126 = vector.broadcast %2 : vector<1x32xf32> to vector<16x32xf32>
    %127 = arith.mulf %125, %126 : vector<16x32xf32>
    %128 = arith.truncf %127 : vector<16x32xf32> to vector<16x32xbf16>
    %c0_21 = arith.constant 0 : index
    %c128 = arith.constant 128 : index
    %129 = vector.load %arg2[%c0_21, %c128] : memref<32x288xbf16, #tpu.memory_space<vmem>>, vector<32x128xbf16>
    %cst_22 = arith.constant dense<0.000000e+00> : vector<16x128xf32>
    %130 = tpu.matmul %128, %129, %cst_22 {dimension_numbers = #tpu.dot_dimension_numbers<[1], [0], [0], [1], [0, 0, 1, 1], [], []>} : vector<16x32xbf16>, vector<32x128xbf16>, vector<16x128xf32> -> vector<16x128xf32>
    %131 = vector.extract_strided_slice %130 {offsets = [0, 0], sizes = [16, 64], strides = [1, 1]} : vector<16x128xf32> to vector<16x64xf32>
    %132 = vector.extract_strided_slice %130 {offsets = [0, 64], sizes = [16, 64], strides = [1, 1]} : vector<16x128xf32> to vector<16x64xf32>
    %133 = arith.negf %131 : vector<16x64xf32>
    %134 = math.exp %133 : vector<16x64xf32>
    %cst_23 = arith.constant 1.000000e+00 : f32
    %135 = vector.broadcast %cst_23 : f32 to vector<16x64xf32>
    %136 = arith.addf %135, %134 : vector<16x64xf32>
    %137 = arith.divf %135, %136 : vector<16x64xf32>
    %138 = arith.mulf %131, %137 : vector<16x64xf32>
    %139 = arith.mulf %138, %132 : vector<16x64xf32>
    %140 = arith.truncf %139 : vector<16x64xf32> to vector<16x64xbf16>
    %c0_24 = arith.constant 0 : index
    %c0_25 = arith.constant 0 : index
    %141 = vector.load %arg3[%c0_24, %c0_25] : memref<64x32xbf16, #tpu.memory_space<vmem>>, vector<64x32xbf16>
    %cst_26 = arith.constant dense<0.000000e+00> : vector<16x32xf32>
    %142 = tpu.matmul %140, %141, %cst_26 {dimension_numbers = #tpu.dot_dimension_numbers<[1], [0], [0], [1], [0, 0, 1, 1], [], []>} : vector<16x64xbf16>, vector<64x32xbf16>, vector<16x32xf32> -> vector<16x32xf32>
    %143 = arith.addf %115, %142 : vector<16x32xf32>
    %c0_27 = arith.constant 0 : index
    %c0_28 = arith.constant 0 : index
    %144 = vector.load %arg4[%c0_27, %c0_28] : memref<16x32xf32, #tpu.memory_space<vmem>>, vector<16x32xf32>
    tpu.vector_store %arg4[%c0_27, %c0_28], %143 {strides = array<i32>} : memref<16x32xf32, #tpu.memory_space<vmem>>, vector<16x32xf32>,
    return
  }
}

</mosaic_0001>

<bundles_post_ra>
// kernel: llama_block_pallas.1
= control target key start
LH: loop header
LB: loop body
LE: loop exit
PB: predicated region body
PF: predicated region fallthrough
CT: control target
= control target key end

     0   :  { %vm29_vm0 = vcmask 261120   ;;  %s1580_s0 = inlined_call_operand.vmem [shape: f32[16,32], index: 0, kind: input, shape index: {}]   ;;  %s1581_s1 = inlined_call_operand.vmem [shape: f32[40,32], index: 1, kind: input, shape index: {}]   ;;  %s1582_s2 = inlined_call_operand.vmem [shape: bf16[32,288], index: 2, kind: input, shape index: {}]   ;;  %s1583_s3 = inlined_call_operand.vmem [shape: bf16[64,32], index: 3, kind: input, shape index: {}]   ;;  %s1584_s4 = inlined_call_operand.hbm [shape: f32[16,32], index: 4, kind: output, shape index: {}]  }
   0x1   :  { %v1325_v0 = vld [vmem:[%s1580_s0] sm:$0xff]  ;;  %v1330_v1 = vld [vmem:[%s1580_s0 + $0x8] sm:$0xff] }
   0x2   :  { %v27_v2 = vmul.f32 %v1325_v0, %v1325_v0  ;;  %v28_v3 = vmul.f32 %v1330_v1, %v1330_v1 }
   0x4   :  { %v30_v4 = vsel %vm29_vm0, %v27_v2, 0.0  ;;  %v33_v5 = vsel %vm29_vm0, %v28_v3, 0.0 }
   0x5   :  { %31 = vadd.xlane.f32.xlu0 %v30_v4 }
   0x6   :  { %9 = vsyncpa [#allocation3], 0  ;;  %v1202_v6 = vld [vmem:[%s1582_s2] ss:$12 sps:$4 sm:$0xff]   ;;  %v1284_v7 = vmov 0.0   ;;  %vm1285_vm1 = vmmov 0  }
   0x7   :  { %1075 = vmatprep.subr.bf16.mxu0 %v1284_v7  ;;  %1079 = vmatprep.mubr.msk.bf16.mxu0 %vm1285_vm1, %v1284_v7  ;;  %v1203_v8 = vld [vmem:[%s1582_s2 + $0x18] ss:$12 sps:$4 sm:$0xff]   ;;  %s1286_s26 = smov 80   ;;  %s1287_s27 = smov 32   ;;  %v23_v11 = vld [vmem:[%s1581_s1 + $0x8] sm:$0xff]  ;;  %v24_v12 = vld [vmem:[%s1581_s1 + $0x10] sm:$0xff] }
   0x8   :  { %1076 = vmatpush3.bf16.msra.mxu0 %v1202_v6  ;;  %1083 = vmatprep.subr.bf16.mxu1 %v1284_v7  ;;  %v25_v9 = vld [vmem:[%s1581_s1 + $0x18] sm:$0xff]  ;;  %v26_v10 = vld [vmem:[%s1581_s1 + $0x20] sm:$0xff]  ;;  %s1288_s30 = smov 64   ;;  %s1289_s9 = smov 112   ;;  %vm218_vm2 = vcmask 64512   ;;  %vm524_vm4 = vcmask 1043456  }
   0x9   :  { %34 = vadd.xlane.f32.xlu0 %v33_v5  ;;  %1077 = vmatprep.subr.bf16.mxu0 %v1284_v7  ;;  %v1019_v22 = vld [vmem:[%s1581_s1] ss:$0 sm:$0xff]  ;;  %s1290_s10 = smov 96   ;;  %s1291_s11 = smov 120   ;;  %vm732_vm5 = vcmask 130048   ;;  %vm734_vm6 = vcmask 195584  }
   0xa   :  { %1085 = vmatprep.mubr.msk.bf16.mxu1 %vm1285_vm1, %v1284_v7  ;;  %144 = vrot.lane.b32.xlu1 %v25_v9, %s1286_s26  ;;  %s1292_s14 = smov 8   ;;  %s1293_s17 = smov 16   ;;  %vm954_vm7 = vcmask 523264  }
   0xb   :  { %s1294_s18 = smov 24  }
   0xc   :  { %1078 = vmatpush3.bf16.msra.mxu0 %v1203_v8 }
   0xd   :  { %1089 = vmatprep.subr.bf16.mxu0 %v1284_v7 }
   0xe   :  { %116 = vrot.lane.b32.xlu1 %v25_v9, %s1287_s27 }
  0x12   :  { %118 = vrot.lane.b32.xlu1 %v26_v10, %s1287_s27 }
  0x16   :  { %136 = vrot.lane.b32.xlu1 %v23_v11, %s1288_s30 }
  0x1a   :  { %138 = vrot.lane.b32.xlu1 %v24_v12, %s1288_s30 }
  0x1f   :  { %146 = vrot.lane.b32.xlu0 %v26_v10, %s1286_s26 }
  0x7c   :  { %v145_v27 = vpop.permute.xlu1 %144 }
  0x80   :  { %v117_v28 = vpop.permute.xlu1 %116 }
  0x84   :  { %v119_v32 = vpop.permute.xlu1 %118 }
  0x88   :  { %v137_v39 = vpop.permute.xlu1 %136 }
  0x8c   :  { %v139_v40 = vpop.permute.xlu1 %138 }
  0x92   :  { %v32_v13 = vpop.xlane.xlu0 %31 }
  0x93   :  { %v37_v14 = vmul.f32 0.03125, %v32_v13 }
  0x95   :  { %v39_v15 = vadd.f32 1e-05, %v37_v14 }
  0x96   :  { %v35_v16 = vpop.xlane.xlu0 %34 }
  0x97   :  { %1212 = vrsqrt.f32 %v39_v15  ;;  %v38_v17 = vmul.f32 0.03125, %v35_v16 }
  0x99   :  { %v40_v18 = vadd.f32 1e-05, %v38_v17 }
  0x9a   :  { %v147_v37 = vpop.permute.xlu0 %146 }
  0x9b   :  { %1214 = vrsqrt.f32 %v40_v18 }
  0xa1   :  { %v1213_v19 = vpop.eup %1212 }
  0xa2   :  { %v43_v20 = vmul.f32 %v1213_v19, %v1325_v0 }
  0xa4   :  { %v49_v24 = vmul.f32 %v1019_v22, %v43_v20 }
  0xa5   :  { %v1215_v21 = vpop.eup %1214 }
  0xa6   :  { %v44_v23 = vmul.f32 %v1215_v21, %v1330_v1 }
  0xa8   :  { %v50_v25 = vmul.f32 %v1019_v22, %v44_v23  ;;  %v210_v22 = vlaneseq }
  0xaa   :  { %v51_v26 = vpack.c.bf16 %v50_v25, %v49_v24  ;;  %v211_v23 = vshrl.u32 %v210_v22, 7  ;;  %v213_v24 = vand.u32 127, %v210_v22 }
  0xac   :  { %1080 = vmatmul.mubr.msk.bf16.vlgmr.msra.gmra.mrb[0].mxu0 %vm29_vm0, %v51_v26  ;;  %vm1419_vm3 = vcmp.gt.s32.totalorder %v213_v24, %v211_v23 }
  0xad   :  { %1091 = vmatprep.mubr.msk.bf16.mxu0 %vm1285_vm1, %v1284_v7 }
 0x17f   :  { %v1376_v29 = vpop.f32.mrb[0].mxu0 }
 0x180   :  { %v1081_v30 = vpop.f32.mrb[1].mxu0  ;;  %v150_v31 = vmul.f32 %v145_v27, %v1376_v29  ;;  %v122_v36 = vmul.f32 %v117_v28, %v1376_v29  ;;  %v142_v41 = vmul.f32 %v137_v39, %v1376_v29  ;;  %v112_v48 = vmul.f32 %v1376_v29, %v23_v11 }
 0x181   :  { %v1379_v33 = vpop.f32.mrb[2].mxu0 }
 0x182   :  { %154 = vrot.lane.b32.xlu1 %v150_v31, %s1289_s9  ;;  %v1082_v34 = vpop.f32.mrb[3].mxu0  ;;  %v123_v35 = vmul.f32 %v119_v32, %v1379_v33  ;;  %v151_v38 = vmul.f32 %v147_v37, %v1379_v33  ;;  %v113_v45 = vmul.f32 %v1379_v33, %v24_v12  ;;  %v143_v49 = vmul.f32 %v139_v40, %v1379_v33 }
 0x184   :  { %128 = vrot.lane.b32.xlu0 %v123_v35, %s1290_s10 }
 0x186   :  { %126 = vrot.lane.b32.xlu1 %v122_v36, %s1290_s10 }
 0x18a   :  { %156 = vrot.lane.b32.xlu1 %v151_v38, %s1289_s9 }
 0x1f4   :  { %v155_v42 = vpop.permute.xlu1 %154 }
 0x1f5   :  { %v160_v43 = vadd.f32 %v155_v42, %v142_v41 }
 0x1f6   :  { %v129_v44 = vpop.permute.xlu0 %128 }
 0x1f7   :  { %187 = vrot.lane.b32.xlu1 %v160_v43, %s1291_s11  ;;  %v133_v47 = vadd.f32 %v129_v44, %v113_v45  ;;  %v194_v54 = vpack.c.bf16 %v160_v43, %v160_v43 }
 0x1f8   :  { %v127_v46 = vpop.permute.xlu1 %126 }
 0x1f9   :  { %v132_v51 = vadd.f32 %v127_v46, %v112_v48 }
 0x1fb   :  { %167 = vrot.lane.b32.xlu1 %v133_v47, %s1291_s11 }
 0x1fc   :  { %v157_v50 = vpop.permute.xlu1 %156 }
 0x1fd   :  { %v161_v52 = vadd.f32 %v157_v50, %v143_v49 }
 0x1ff   :  { %v1172_v53 = vpack.i.bf16 %v161_v52, %v132_v51  ;;  %v196_v57 = vpack.c.bf16 %v161_v52, %v161_v52 }
 0x201   :  { %1173 = vrot.lane.b32.xlu0 %v1172_v53, %s1291_s11 }
 0x205   :  { %216 = vrot.lane.b32.xlu0 %v194_v54, %s1288_s30 }
 0x269   :  { %v188_v55 = vpop.permute.xlu1 %187 }
 0x26a   :  { %v195_v56 = vpack.c.bf16 %v188_v55, %v188_v55 }
 0x26c   :  { %267 = vrot.lane.b32.xlu1 %v195_v56, %s1288_s30 }
 0x26d   :  { %v168_v58 = vpop.permute.xlu1 %167 }
 0x26e   :  { %v1182_v59 = vpack.i.bf16 %v168_v58, %v133_v47  ;;  %v184_v11 = vpack.c.bf16 %v168_v58, %v133_v47 }
 0x270   :  { %317 = vrot.lane.b32.xlu1 %v196_v57, %s1288_s30 }
 0x273   :  { %v1174_v60 = vpop.permute.xlu0 %1173 }
 0x274   :  { %v1175_v61 = vunpack.i.l.bf16 %v1174_v60  ;;  %1183 = vrot.lane.b32.xlu1 %v1182_v59, %s1289_s9  ;;  %v1176_v62 = vunpack.i.h.bf16 %v1174_v60  ;;  %v206_v60 = vpack.c.bf16 %v1376_v29, %v1376_v29 }
 0x276   :  { %v1177_v63 = vpack.i.bf16 %v1175_v61, %v132_v51  ;;  %v197_v4 = vpack.c.bf16 %v1176_v62, %v1176_v62  ;;  %v182_v5 = vpack.c.bf16 %v1175_v61, %v132_v51 }
 0x277   :  { %v217_v2 = vpop.permute.xlu0 %216 }
 0x278   :  { %1178 = vrot.lane.b32.xlu0 %v1177_v63, %s1289_s9  ;;  %v223_v3 = vsel %vm218_vm2, %v217_v2, 0 }
 0x279   :  { %1084 = vmatpush3.bf16.xpose.msra.mxu1 %v223_v3 }
 0x27a   :  { %1095 = vmatprep.subr.bf16.mxu1 %v1284_v7 }
 0x27c   :  { %367 = vrot.lane.b32.xlu0 %v197_v4, %s1288_s30 }
 0x280   :  { %1086 = vmatmul.mubr.msk.bf16.vlgmr.msra.gmra.mrb[0].mxu1 %vm218_vm2, %v182_v5 }
 0x281   :  { %1097 = vmatprep.mubr.msk.bf16.mxu1 %vm1285_vm1, %v1284_v7 }
 0x2de   :  { %v268_v6 = vpop.permute.xlu1 %267 }
 0x2df   :  { %v273_v8 = vsel %vm218_vm2, %v268_v6, 0 }
 0x2e0   :  { %1090 = vmatpush3.bf16.xpose.msra.mxu0 %v273_v8 }
 0x2e1   :  { %1101 = vmatprep.subr.bf16.mxu0 %v1284_v7 }
 0x2e2   :  { %v318_v9 = vpop.permute.xlu1 %317 }
 0x2e3   :  { %v323_v10 = vsel %vm218_vm2, %v318_v9, 0 }
 0x2e4   :  { %1096 = vmatpush3.bf16.xpose.msra.mxu1 %v323_v10 }
 0x2e5   :  { %1107 = vmatprep.subr.bf16.mxu1 %v1284_v7 }
 0x2e6   :  { %v1184_v16 = vpop.permute.xlu1 %1183 }
 0x2e7   :  { %v1186_v19 = vunpack.i.h.bf16 %v1184_v16  ;;  %v1185_v20 = vunpack.i.l.bf16 %v1184_v16 }
 0x2e9   :  { %v185_v21 = vpack.c.bf16 %v1186_v19, %v1185_v20 }
 0x2ea   :  { %v1179_v12 = vpop.permute.xlu0 %1178 }
 0x2eb   :  { %v1181_v13 = vunpack.i.h.bf16 %v1179_v12  ;;  %v1180_v14 = vunpack.i.l.bf16 %v1179_v12  ;;  %1098 = vmatmul.mubr.msk.bf16.vlgmr.msra.gmra.mrb[4].mxu1 %vm218_vm2, %v184_v11 }
 0x2ec   :  { %1109 = vmatprep.mubr.msk.bf16.mxu1 %vm1285_vm1, %v1284_v7 }
 0x2ed   :  { %v183_v15 = vpack.c.bf16 %v1181_v13, %v1180_v14 }
 0x2ee   :  { %v368_v17 = vpop.permute.xlu0 %367 }
 0x2ef   :  { %v373_v18 = vsel %vm218_vm2, %v368_v17, 0  ;;  %1092 = vmatmul.mubr.msk.bf16.vlgmr.msra.gmra.mrb[4].mxu0 %vm218_vm2, %v183_v15 }
 0x2f0   :  { %1102 = vmatpush3.bf16.xpose.msra.mxu0 %v373_v18  ;;  %1103 = vmatprep.mubr.msk.bf16.mxu0 %vm1285_vm1, %v1284_v7 }
 0x2f1   :  { %1113 = vmatprep.subr.bf16.mxu0 %v1284_v7 }
 0x2f7   :  { %1104 = vmatmul.mubr.msk.bf16.vlgmr.msra.gmra.mrb[8].mxu0 %vm218_vm2, %v185_v21 }
 0x2f8   :  { %1115 = vmatprep.mubr.msk.bf16.mxu0 %vm1285_vm1, %v1284_v7 }
 0x353   :  { %v259_v26 = vpop.f32.mrb[0].mxu1 }
 0x354   :  { %v418_v27 = vsel %vm1419_vm3, -1e+30, %v259_v26  ;;  %v1087_v28 = vpop.f32.mrb[1].mxu1 }
 0x355   :  { %v262_v30 = vpop.f32.mrb[2].mxu1  ;;  %v426_v31 = vsel %vm218_vm2, %v418_v27, -inf }
 0x356   :  { %v419_v32 = vsel %vm1419_vm3, -1e+30, %v262_v30  ;;  %v1088_v34 = vpop.f32.mrb[3].mxu1  ;;  %427 = vmax.xlane.f32.xlu0 %v426_v31 }
 0x357   :  { %v429_v35 = vsel %vm218_vm2, %v419_v32, -inf }
 0x358   :  { %430 = vmax.xlane.f32.xlu1 %v429_v35 }
 0x3be   :  { %v359_v36 = vpop.f32.mrb[4].mxu1 }
 0x3bf   :  { %v422_v37 = vsel %vm1419_vm3, -1e+30, %v359_v36  ;;  %v1099_v38 = vpop.f32.mrb[5].mxu1 }
 0x3c0   :  { %v362_v39 = vpop.f32.mrb[6].mxu1  ;;  %v438_v40 = vsel %vm218_vm2, %v422_v37, -inf }
 0x3c1   :  { %439 = vmax.xlane.f32.xlu1 %v438_v40  ;;  %v1100_v41 = vpop.f32.mrb[7].mxu1  ;;  %v423_v50 = vsel %vm1419_vm3, -1e+30, %v362_v39 }
 0x3c2   :  { %v309_v42 = vpop.f32.mrb[4].mxu0  ;;  %v441_v55 = vsel %vm218_vm2, %v423_v50, -inf }
 0x3c3   :  { %v420_v43 = vsel %vm1419_vm3, -1e+30, %v309_v42  ;;  %v1093_v44 = vpop.f32.mrb[5].mxu0 }
 0x3c4   :  { %v312_v45 = vpop.f32.mrb[6].mxu0  ;;  %v432_v46 = vsel %vm218_vm2, %v420_v43, -inf  ;;  %v208_v44 = vpack.c.bf16 %v1379_v33, %v1379_v33 }
 0x3c5   :  { %v421_v47 = vsel %vm1419_vm3, -1e+30, %v312_v45  ;;  %433 = vmax.xlane.f32.xlu0 %v432_v46  ;;  %v1094_v48 = vpop.f32.mrb[7].mxu0 }
 0x3c6   :  { %v435_v49 = vsel %vm218_vm2, %v421_v47, -inf }
 0x3c9   :  { %436 = vmax.xlane.f32.xlu0 %v435_v49 }
 0x3ca   :  { %v409_v51 = vpop.f32.mrb[8].mxu0 }
 0x3cb   :  { %v424_v52 = vsel %vm1419_vm3, -1e+30, %v409_v51  ;;  %v1105_v53 = vpop.f32.mrb[9].mxu0 }
 0x3cc   :  { %v412_v54 = vpop.f32.mrb[10].mxu0  ;;  %v444_v56 = vsel %vm218_vm2, %v424_v52, -inf }
 0x3cd   :  { %v425_v57 = vsel %vm1419_vm3, -1e+30, %v412_v54  ;;  %442 = vmax.xlane.f32.xlu0 %v441_v55  ;;  %445 = vmax.xlane.f32.xlu1 %v444_v56  ;;  %v1106_v58 = vpop.f32.mrb[11].mxu0 }
 0x3ce   :  { %v447_v59 = vsel %vm218_vm2, %v425_v57, -inf }
 0x3d1   :  { %448 = vmax.xlane.f32.xlu0 %v447_v59 }
 0x3de   :  { %199 = vrot.lane.b32.xlu1 %v1376_v29, %s1291_s11 }
 0x3e2   :  { %519 = vrot.lane.b32.xlu1 %v206_v60, %s1287_s27 }
 0x3e3   :  { %v428_v61 = vpop.xlane.xlu0 %427 }
 0x3e4   :  { %v450_v63 = vsub.f32 %v418_v27, %v428_v61 }
 0x3e5   :  { %v431_v62 = vpop.xlane.xlu1 %430 }
 0x3e6   :  { %v451_v2 = vsub.f32 %v419_v32, %v431_v62  ;;  %v458_v3 = vmul.f32 1.442695, %v450_v63 }
 0x3e7   :  { %203 = vrot.lane.b32.xlu0 %v1379_v33, %s1291_s11 }
 0x3e8   :  { %v460_v4 = vmul.f32 1.442695, %v451_v2  ;;  %1216 = vpow2.f32 %v458_v3 }
 0x3ea   :  { %1218 = vpow2.f32 %v460_v4 }
 0x3f2   :  { %v1454_v5 = vpop.eup %1216 }
 0x3f3   :  { %v474_v29 = vsel %vm218_vm2, %v1454_v5, 0.0 }
 0x3f4   :  { %v1456_v6 = vpop.eup %1218 }
 0x3f5   :  { %v477_v8 = vsel %vm218_vm2, %v1456_v6, 0.0 }
 0x406   :  { %475 = vadd.xlane.f32.xlu1 %v474_v29  ;;  %478 = vadd.xlane.f32.xlu0 %v477_v8 }
 0x44e   :  { %v440_v9 = vpop.xlane.xlu1 %439 }
 0x44f   :  { %v454_v10 = vsub.f32 %v422_v37, %v440_v9 }
 0x451   :  { %v466_v11 = vmul.f32 1.442695, %v454_v10 }
 0x452   :  { %v434_v12 = vpop.xlane.xlu0 %433 }
 0x453   :  { %1220 = vpow2.f32 %v466_v11  ;;  %v452_v13 = vsub.f32 %v420_v43, %v434_v12 }
 0x455   :  { %v462_v14 = vmul.f32 1.442695, %v452_v13 }
 0x456   :  { %v437_v15 = vpop.xlane.xlu0 %436 }
 0x457   :  { %1222 = vpow2.f32 %v462_v14  ;;  %v453_v16 = vsub.f32 %v421_v47, %v437_v15 }
 0x459   :  { %v464_v22 = vmul.f32 1.442695, %v453_v16 }
 0x45a   :  { %v443_v17 = vpop.xlane.xlu0 %442  ;;  %v446_v18 = vpop.xlane.xlu1 %445 }
 0x45b   :  { %v455_v19 = vsub.f32 %v423_v50, %v443_v17  ;;  %v456_v20 = vsub.f32 %v424_v52, %v446_v18 }
 0x45d   :  { %v1462_v21 = vpop.eup %1220  ;;  %v468_v23 = vmul.f32 1.442695, %v455_v19  ;;  %v470_v24 = vmul.f32 1.442695, %v456_v20 }
 0x45e   :  { %v200_v25 = vpop.permute.xlu1 %199  ;;  %v449_v26 = vpop.xlane.xlu0 %448  ;;  %v486_v27 = vsel %vm218_vm2, %v1462_v21, 0.0 }
 0x45f   :  { %1224 = vpow2.f32 %v468_v23  ;;  %v457_v28 = vsub.f32 %v425_v57, %v449_v26  ;;  %487 = vadd.xlane.f32.xlu1 %v486_v27  ;;  %v207_v47 = vpack.c.bf16 %v200_v25, %v200_v25  ;;  %v1204_v25 = vld [vmem:[%s1582_s2 + $0x8] ss:$12 sps:$4 sm:$0xff]  }
 0x460   :  { %1226 = vpow2.f32 %v470_v24 }
 0x461   :  { %v1466_v30 = vpop.eup %1222  ;;  %1228 = vpow2.f32 %v464_v22  ;;  %v472_v31 = vmul.f32 1.442695, %v457_v28 }
 0x462   :  { %v520_v32 = vpop.permute.xlu1 %519  ;;  %v480_v34 = vsel %vm218_vm2, %v1466_v30, 0.0  ;;  %v204_v45 = vpop.permute.xlu0 %203 }
 0x463   :  { %v526_v35 = vsel %vm524_vm4, %v520_v32, 0  ;;  %481 = vadd.xlane.f32.xlu1 %v480_v34  ;;  %1230 = vpow2.f32 %v472_v31  ;;  %v209_v46 = vpack.c.bf16 %v204_v45, %v204_v45  ;;  %v1205_v32 = vld [vmem:[%s1582_s2 + $0x20] ss:$12 sps:$4 sm:$0xff]  }
 0x464   :  { %1108 = vmatpush3.bf16.msra.mxu1 %v526_v35 }
 0x465   :  { %1119 = vmatprep.subr.bf16.mxu1 %v1284_v7 }
 0x469   :  { %v1225_v36 = vpop.eup %1224 }
 0x46a   :  { %v1472_v37 = vpop.eup %1226  ;;  %v489_v38 = vsel %vm218_vm2, %v1225_v36, 0.0 }
 0x46b   :  { %v1229_v39 = vpop.eup %1228  ;;  %v492_v40 = vsel %vm218_vm2, %v1472_v37, 0.0  ;;  %490 = vadd.xlane.f32.xlu0 %v489_v38 }
 0x46c   :  { %493 = vadd.xlane.f32.xlu1 %v492_v40  ;;  %v483_v41 = vsel %vm218_vm2, %v1229_v39, 0.0 }
 0x46d   :  { %v1231_v42 = vpop.eup %1230 }
 0x46e   :  { %v495_v43 = vsel %vm218_vm2, %v1231_v42, 0.0 }
 0x46f   :  { %484 = vadd.xlane.f32.xlu0 %v483_v41 }
 0x473   :  { %496 = vadd.xlane.f32.xlu0 %v495_v43 }
 0x47d   :  { %620 = vrot.lane.b32.xlu1 %v208_v44, %s1287_s27 }
 0x481   :  { %670 = vrot.lane.b32.xlu1 %v209_v46, %s1287_s27 }
 0x489   :  { %570 = vrot.lane.b32.xlu0 %v207_v47, %s1287_s27 }
 0x493   :  { %v476_v48 = vpop.xlane.xlu1 %475  ;;  %v479_v49 = vpop.xlane.xlu0 %478 }
 0x494   :  { %1232 = vrcp.f32 %v476_v48 }
 0x495   :  { %1234 = vrcp.f32 %v479_v49 }
 0x49e   :  { %v1233_v50 = vpop.eup %1232 }
 0x49f   :  { %v1235_v51 = vpop.eup %1234  ;;  %v506_v52 = vmul.f32 %v1233_v50, %v1454_v5 }
 0x4a0   :  { %v507_v53 = vmul.f32 %v1235_v51, %v1456_v6 }
 0x4a2   :  { %v514_v33 = vpack.c.bf16 %v507_v53, %v506_v52 }
 0x4a4   :  { %1110 = vmatmul.mubr.msk.bf16.vlgmr.msra.gmra.mrb[8].mxu1 %vm218_vm2, %v514_v33 }
 0x4a5   :  { %1121 = vmatprep.mubr.msk.bf16.mxu1 %vm1285_vm1, %v1284_v7 }
 0x4ec   :  { %v488_v54 = vpop.xlane.xlu1 %487 }
 0x4ed   :  { %1236 = vrcp.f32 %v488_v54 }
 0x4f0   :  { %v482_v55 = vpop.xlane.xlu1 %481 }
 0x4f7   :  { %v1237_v62 = vpop.eup %1236 }
 0x4f8   :  { %v491_v56 = vpop.xlane.xlu0 %490  ;;  %v510_v2 = vmul.f32 %v1237_v62, %v1462_v21 }
 0x4f9   :  { %v494_v57 = vpop.xlane.xlu1 %493  ;;  %1238 = vrcp.f32 %v491_v56 }
 0x4fa   :  { %1240 = vrcp.f32 %v482_v55 }
 0x4fc   :  { %v485_v58 = vpop.xlane.xlu0 %484 }
 0x4fd   :  { %v621_v59 = vpop.permute.xlu1 %620  ;;  %1242 = vrcp.f32 %v485_v58 }
 0x4fe   :  { %v626_v60 = vsel %vm524_vm4, %v621_v59, 0 }
 0x4ff   :  { %1120 = vmatpush3.bf16.msra.mxu1 %v626_v60 }
 0x500   :  { %v497_v61 = vpop.xlane.xlu0 %496  ;;  %1131 = vmatprep.subr.bf16.mxu1 %v1284_v7 }
 0x501   :  { %1244 = vrcp.f32 %v497_v61  ;;  %v671_v11 = vpop.permute.xlu1 %670 }
 0x502   :  { %1246 = vrcp.f32 %v494_v57  ;;  %v676_v14 = vsel %vm524_vm4, %v671_v11, 0 }
 0x503   :  { %v1239_v63 = vpop.eup %1238 }
 0x504   :  { %v511_v3 = vmul.f32 %v1239_v63, %v1225_v36  ;;  %v571_v4 = vpop.permute.xlu0 %570  ;;  %v1241_v5 = vpop.eup %1240 }
 0x505   :  { %v576_v6 = vsel %vm524_vm4, %v571_v4, 0  ;;  %v508_v9 = vmul.f32 %v1241_v5, %v1466_v30 }
 0x506   :  { %1114 = vmatpush3.bf16.msra.mxu0 %v576_v6  ;;  %v516_v29 = vpack.c.bf16 %v511_v3, %v510_v2 }
 0x507   :  { %v1243_v8 = vpop.eup %1242  ;;  %1125 = vmatprep.subr.bf16.mxu0 %v1284_v7 }
 0x508   :  { %v509_v10 = vmul.f32 %v1243_v8, %v1229_v39  ;;  %1122 = vmatmul.mubr.msk.bf16.vlgmr.msra.gmra.mrb[12].mxu1 %vm218_vm2, %v516_v29 }
 0x509   :  { %1135 = vmatprep.mubr.msk.bf16.mxu1 %vm1285_vm1, %v1284_v7  ;;  %1132 = vmatpush3.bf16.msra.mxu1 %v1204_v25 }
 0x50a   :  { %v515_v12 = vpack.c.bf16 %v509_v10, %v508_v9  ;;  %1133 = vmatprep.subr.bf16.mxu1 %v1284_v7 }
 0x50b   :  { %v1245_v13 = vpop.eup %1244 }
 0x50c   :  { %1116 = vmatmul.mubr.msk.bf16.vlgmr.msra.gmra.mrb[12].mxu0 %vm218_vm2, %v515_v12  ;;  %v1247_v15 = vpop.eup %1246  ;;  %v513_v16 = vmul.f32 %v1245_v13, %v1231_v42 }
 0x50d   :  { %1126 = vmatpush3.bf16.msra.mxu0 %v676_v14  ;;  %1127 = vmatprep.mubr.msk.bf16.mxu0 %vm1285_vm1, %v1284_v7  ;;  %v512_v17 = vmul.f32 %v1247_v15, %v1472_v37  ;;  %v1034_v14 = vld [vmem:[%s1581_s1 + $0x1] ss:$0 sm:$0xff] }
 0x50e   :  { %1139 = vmatprep.subr.bf16.mxu0 %v1284_v7  ;;  %1134 = vmatpush3.bf16.msra.mxu1 %v1205_v32 }
 0x50f   :  { %v517_v18 = vpack.c.bf16 %v513_v16, %v512_v17  ;;  %1147 = vmatprep.subr.bf16.mxu1 %v1284_v7 }
 0x514   :  { %1128 = vmatmul.mubr.msk.bf16.vlgmr.msra.gmra.mrb[16].mxu0 %vm218_vm2, %v517_v18 }
 0x515   :  { %1143 = vmatprep.mubr.msk.bf16.mxu0 %vm1285_vm1, %v1284_v7 }
 0x577   :  { %v562_v19 = vpop.f32.mrb[8].mxu1 }
 0x578   :  { %v1111_v20 = vpop.f32.mrb[9].mxu1 }
 0x579   :  { %v565_v21 = vpop.f32.mrb[10].mxu1  ;;  %v1209_v20 = vld [vmem:[%s1583_s3 + $0x8] sm:$0xff]  }
 0x57a   :  { %v1112_v22 = vpop.f32.mrb[11].mxu1 }
 0x57b   :  { %v1211_v22 = vld [vmem:[%s1583_s3 + $0x18] sm:$0xff]  }
 0x5db   :  { %v662_v23 = vpop.f32.mrb[12].mxu1 }
 0x5dc   :  { %v1123_v24 = vpop.f32.mrb[13].mxu1 }
 0x5dd   :  { %v665_v26 = vpop.f32.mrb[14].mxu1 }
 0x5de   :  { %v1187_v27 = vpack.i.bf16 %v665_v26, %v565_v21  ;;  %v1124_v28 = vpop.f32.mrb[15].mxu1  ;;  %v1210_v21 = vld [vmem:[%s1583_s3 + $0x10] sm:$0xff]  }
 0x5df   :  { %v612_v30 = vpop.f32.mrb[12].mxu0 }
 0x5e0   :  { %1188 = vrot.lane.b32.xlu0 %v1187_v27, %s1292_s14  ;;  %v1117_v31 = vpop.f32.mrb[13].mxu0 }
 0x5e1   :  { %v615_v34 = vpop.f32.mrb[14].mxu0 }
 0x5e2   :  { %v1118_v35 = vpop.f32.mrb[15].mxu0 }
 0x5e7   :  { %v712_v36 = vpop.f32.mrb[16].mxu0 }
 0x5e8   :  { %v1192_v37 = vpack.i.bf16 %v712_v36, %v612_v30  ;;  %v1129_v38 = vpop.f32.mrb[17].mxu0 }
 0x5e9   :  { %v715_v39 = vpop.f32.mrb[18].mxu0 }
 0x5ea   :  { %v1197_v40 = vpack.i.bf16 %v715_v39, %v615_v34  ;;  %1193 = vrot.lane.b32.xlu1 %v1192_v37, %s1293_s17  ;;  %v1130_v41 = vpop.f32.mrb[19].mxu0 }
 0x5ec   :  { %1198 = vrot.lane.b32.xlu0 %v1197_v40, %s1294_s18 }
 0x652   :  { %v1189_v42 = vpop.permute.xlu0 %1188 }
 0x653   :  { %v1191_v43 = vunpack.i.h.bf16 %v1189_v42  ;;  %v1190_v44 = vunpack.i.l.bf16 %v1189_v42 }
 0x655   :  { %v748_v48 = vsel %vm218_vm2, %v662_v23, %v1191_v43  ;;  %v731_v49 = vsel %vm218_vm2, %v562_v19, %v1190_v44  ;;  %v1208_v19 = vld [vmem:[%s1583_s3] sm:$0xff]   ;;  %s1295_s3 = smov [#allocation2]  }
 0x65c   :  { %v1194_v45 = vpop.permute.xlu1 %1193 }
 0x65d   :  { %v1196_v46 = vunpack.i.h.bf16 %v1194_v45  ;;  %v1195_v47 = vunpack.i.l.bf16 %v1194_v45 }
 0x65e   :  { %v1199_v50 = vpop.permute.xlu0 %1198 }
 0x65f   :  { %v749_v51 = vsel %vm732_vm5, %v748_v48, %v1196_v46  ;;  %v733_v52 = vsel %vm732_vm5, %v731_v49, %v1195_v47  ;;  %v1201_v53 = vunpack.i.h.bf16 %v1199_v50  ;;  %v1200_v33 = vunpack.i.l.bf16 %v1199_v50 }
 0x661   :  { %v750_v54 = vsel %vm734_vm6, %v749_v51, %v1201_v53  ;;  %v735_v55 = vsel %vm734_vm6, %v733_v52, %v1200_v33 }
 0x662   :  { %v751_v56 = vpack.c.bf16 %v750_v54, %v735_v55 }
 0x664   :  { %1136 = vmatmul.mubr.msk.bf16.vlgmr.msra.gmra.mrb[16].mxu1 %vm29_vm0, %v751_v56 }
 0x665   :  { %1155 = vmatprep.mubr.msk.bf16.mxu1 %vm1285_vm1, %v1284_v7  ;;  %1148 = vmatpush3.bf16.msra.mxu1 %v1208_v19 }
 0x666   :  { %1149 = vmatprep.subr.bf16.mxu1 %v1284_v7 }
 0x669   :  { %1150 = vmatpush3.bf16.msra.mxu1 %v1209_v20 }
 0x66a   :  { %1151 = vmatprep.subr.bf16.mxu1 %v1284_v7 }
 0x66d   :  { %1152 = vmatpush3.bf16.msra.mxu1 %v1210_v21 }
 0x66e   :  { %1153 = vmatprep.subr.bf16.mxu1 %v1284_v7 }
 0x671   :  { %1154 = vmatpush3.bf16.msra.mxu1 %v1211_v22 }
 0x737   :  { %v805_v57 = vpop.f32.mrb[16].mxu1 }
 0x738   :  { %v1522_v58 = vadd.f32 %v805_v57, %v1325_v0  ;;  %v1137_v59 = vpop.f32.mrb[17].mxu1  ;;  %v1206_v0 = vld [vmem:[%s1582_s2 + $0x4] ss:$12 sps:$4 sm:$0xff]  }
 0x739   :  { %v808_v60 = vpop.f32.mrb[18].mxu1  ;;  %1140 = vmatpush3.bf16.msra.mxu0 %v1206_v0 }
 0x73a   :  { %v1525_v61 = vadd.f32 %v808_v60, %v1330_v1  ;;  %v1138_v62 = vpop.f32.mrb[19].mxu1  ;;  %v814_v63 = vmul.f32 %v1522_v58, %v1522_v58  ;;  %v1207_v1 = vld [vmem:[%s1582_s2 + $0x1c] ss:$12 sps:$4 sm:$0xff]   ;;  %1141 = vmatprep.subr.bf16.mxu0 %v1284_v7 }
 0x73c   :  { %v816_v2 = vsel %vm29_vm0, %v814_v63, 0.0  ;;  %v815_v3 = vmul.f32 %v1525_v61, %v1525_v61 }
 0x73d   :  { %817 = vadd.xlane.f32.xlu1 %v816_v2  ;;  %1142 = vmatpush3.bf16.msra.mxu0 %v1207_v1 }
 0x73e   :  { %v819_v4 = vsel %vm29_vm0, %v815_v3, 0.0 }
 0x73f   :  { %820 = vadd.xlane.f32.xlu0 %v819_v4 }
 0x7ca   :  { %v818_v5 = vpop.xlane.xlu1 %817 }
 0x7cb   :  { %v822_v6 = vmul.f32 0.03125, %v818_v5 }
 0x7cc   :  { %v821_v29 = vpop.xlane.xlu0 %820 }
 0x7cd   :  { %v824_v8 = vadd.f32 1e-05, %v822_v6  ;;  %v823_v9 = vmul.f32 0.03125, %v821_v29 }
 0x7cf   :  { %1248 = vrsqrt.f32 %v824_v8  ;;  %v825_v10 = vadd.f32 1e-05, %v823_v9 }
 0x7d1   :  { %1250 = vrsqrt.f32 %v825_v10 }
 0x7d9   :  { %v1249_v11 = vpop.eup %1248 }
 0x7da   :  { %v828_v12 = vmul.f32 %v1249_v11, %v1522_v58 }
 0x7db   :  { %v1251_v13 = vpop.eup %1250 }
 0x7dc   :  { %v829_v15 = vmul.f32 %v1251_v13, %v1525_v61  ;;  %v834_v16 = vmul.f32 %v1034_v14, %v828_v12 }
 0x7de   :  { %v835_v17 = vmul.f32 %v1034_v14, %v829_v15 }
 0x7e0   :  { %v836_v18 = vpack.c.bf16 %v835_v17, %v834_v16 }
 0x7e2   :  { %1144 = vmatmul.mubr.msk.bf16.vlgmr.msra.gmra.mrb[20].mxu0 %vm29_vm0, %v836_v18 }
 0x8b5   :  { %v890_v23 = vpop.f32.mrb[20].mxu0 }
 0x8b6   :  { %913 = vrot.lane.b32.xlu0 %v890_v23, %s1288_s30  ;;  %v1145_v24 = vpop.f32.mrb[21].mxu0  ;;  %v1038_v27 = vmul.f32 -1.442695, %v890_v23 }
 0x8b7   :  { %v893_v25 = vpop.f32.mrb[22].mxu0 }
 0x8b8   :  { %915 = vrot.lane.b32.xlu1 %v893_v25, %s1288_s30  ;;  %v1146_v26 = vpop.f32.mrb[23].mxu0  ;;  %v1039_v28 = vmul.f32 -1.442695, %v893_v25  ;;  %1252 = vpow2.f32 %v1038_v27  ;;  %s1008_s30 = sshll.u32 %s1295_s3, 4  ;;  %s1009_s30 = int_to_ptr.vmem [resolvable:$true] %s1008_s30 }
 0x8b9   :  { %s1260_s5 = scalar_lea.vmem %s1009_s30, 256  ;;  %p1265_p1 = scmp.lt.s32.totalorder %s1009_s30, %s1009_s30 }
 0x8ba   :  { %1254 = vpow2.f32 %v1039_v28  ;;  %p1261_p0 = scmp.ne.s32.totalorder %s1009_s30, %s1260_s5  ;;  %p1266_p2 = scmp.lt.s32.totalorder %s1260_s5, %s1260_s5 }
 0x8bc   :  { %p1267_p3 = por %p1266_p2, %p1265_p1 }
 0x8be   :  { %p1268_p4 = pnand %p1267_p3, %p1261_p0 }
 0x8c2   :  { %v1253_v30 = vpop.eup %1252 }
 0x8c3   :  { %v903_v7 = vadd.f32 1.0, %v1253_v30 }
 0x8c4   :  { %v1255_v31 = vpop.eup %1254 }
 0x8c5   :  { %v904_v32 = vadd.f32 1.0, %v1255_v31  ;;  %1256 = vrcp.f32 %v903_v7 }
 0x8c7   :  { %1258 = vrcp.f32 %v904_v32 }
 0x8cf   :  { %v1257_v34 = vpop.eup %1256 }
 0x8d0   :  { %v909_v37 = vmul.f32 %v1257_v34, %v890_v23 }
 0x8d1   :  { %v1259_v35 = vpop.eup %1258 }
 0x8d2   :  { %v910_v38 = vmul.f32 %v1259_v35, %v893_v25 }
 0x928   :  { %v914_v36 = vpop.permute.xlu0 %913 }
 0x929   :  { %v919_v40 = vmul.f32 %v914_v36, %v909_v37 }
 0x92a   :  { %v916_v39 = vpop.permute.xlu1 %915 }
 0x92b   :  { %v920_v41 = vmul.f32 %v916_v39, %v910_v38 }
 0x92d   :  { %v921_v42 = vpack.c.bf16 %v920_v41, %v919_v40 }
 0x92f   :  { %1156 = vmatmul.mubr.msk.bf16.vlgmr.msra.gmra.mrb[20].mxu1 %vm954_vm7, %v921_v42 }
 0xa02   :  { %v992_v43 = vpop.f32.mrb[20].mxu1 }
 0xa03   :  { %v999_v44 = vadd.f32 %v992_v43, %v1522_v58  ;;  %v1157_v45 = vpop.f32.mrb[21].mxu1 }
 0xa04   :  { %v995_v46 = vpop.f32.mrb[22].mxu1 }
 0xa05   :  { %1001 = vst.msk [vmem:[#allocation2] sm:$0xff] %vm29_vm0, %v999_v44  ;;  %v1000_v47 = vadd.f32 %v995_v46, %v1525_v61  ;;  %v1158_v48 = vpop.f32.mrb[23].mxu1 }
 0xa07   :  { %1002 = vst.msk [vmem:[#allocation2 + $0x8] sm:$0xff] %vm29_vm0, %v1000_v47 }
 0xa08   :  { %1271 = shalt.err (!%p1268_p4)
}
 0xa09   :  { %s1272_s8 = scalar_lea.hbm %s1584_s4, 256 }
 0xa0a   :  { %p1273_p5 = scmp.ne.s32.totalorder %s1584_s4, %s1272_s8  ;;  %p1276_p6 = scmp.lt.u32.totalorder %s1272_s8, %s1584_s4 }
 0xa0c   :  { %p1278_p7 = pnand %p1276_p6, %p1273_p5 }
 0xa0e   :  { %1281 = shalt.err (!%p1278_p7)
}
 0xa0f   :  { %s1296_s13 = smov 128  }
 0xa10   :  { %1014 = dma.vmem_to_hbm [thread:$0]  %s1009_s30, 256, %s1584_s4, [#allocation3], %s1296_s13, %s1296_s13, %s1292_s14  }
 0xa11   :  { %1282 = dma.done.wait [#allocation3], 256  }
 0xa12   :  { %1283 = vsyncadd [#allocation3], 4294967040 }
 0xa13   :  { %1018 = vsyncpa [#allocation3], 1 }

</bundles_post_ra>
